<compile_context>
chip_gen: v7x
topology: tpu7x:2x2x1
jax: 0.10.0
libtpu: 0.0.40
codegen_flags: <defaults>
</compile_context>

<pallas_src>
import math

import jax
import jax.numpy as jnp
from jax.experimental import pallas as pl
from jax.experimental.pallas import tpu as pltpu


# ----------------------------------------------------------------------------
# Single-step kernel (one pallas_call per cell invocation)
# ----------------------------------------------------------------------------
def _lstm_cell_kernel(xh_ref, cx_ref, wg_ref, wpif_ref, wpo_ref, b_ref, hc_ref):
    """xh_ref : (B, Cin+H)  bf16   (= [x | hx], pre-concatenated in wrapper)
    cx_ref : (B, H)       f32
    wg_ref : (Cin+H, 4H)  bf16   (= [w_ih.T ; w_hh.T])
    wpif_ref: (H, 2H)     bf16   (= [w_pi.T | w_pf.T])
    wpo_ref: (H, H)       bf16   (= w_po.T)
    b_ref  : (1, 4H)      f32    (= b_ih + b_hh)
    hc_ref : (B, 2H)      f32    (= [hy | cy], packed output)
    """
    H = cx_ref.shape[1]
    xh = xh_ref[...]
    cx = cx_ref[...]

    # Fused gate matmul (MXU, f32 accumulation) + fused bias.
    gates = jnp.dot(xh, wg_ref[...], preferred_element_type=jnp.float32) + b_ref[...]

    # Fused peephole matmul for the i/f corrections.
    pif = jnp.dot(cx.astype(wpif_ref.dtype), wpif_ref[...],
                  preferred_element_type=jnp.float32)

    ingate = jax.nn.sigmoid(gates[:, 0 * H:1 * H] + pif[:, 0:H])
    forgetgate = jax.nn.sigmoid(gates[:, 1 * H:2 * H] + pif[:, H:2 * H])
    cellgate = jnp.tanh(gates[:, 2 * H:3 * H])

    cy = forgetgate * cx + ingate * cellgate

    outgate = jax.nn.sigmoid(
        gates[:, 3 * H:4 * H]
        + jnp.dot(cy.astype(wpo_ref.dtype), wpo_ref[...],
                  preferred_element_type=jnp.float32))
    hy = outgate * jnp.tanh(cy)

    hc_ref[...] = jnp.concatenate([hy, cy], axis=1).astype(hc_ref.dtype)


# ----------------------------------------------------------------------------
# Sequence kernel: whole time loop in one pallas_call, weights resident in
# VMEM (constant index_map), h/c carried in VMEM scratch.
# ----------------------------------------------------------------------------
def _lstm_seq_kernel(x_ref, h0_ref, c0_ref, wih_ref, whh_ref, wpif_ref,
                     wpo_ref, b_ref, hseq_ref, cseq_ref, h_sc, c_sc):
    H = h_sc.shape[1]

    @pl.when(pl.program_id(0) == 0)
    def _():
        h_sc[...] = h0_ref[...]
        c_sc[...] = c0_ref[...]

    x = x_ref[0]            # (B, Cin) bf16
    h = h_sc[...]           # (B, H)   f32 carry
    c = c_sc[...]           # (B, H)   f32 carry

    gates = (jnp.dot(x, wih_ref[...], preferred_element_type=jnp.float32)
             + jnp.dot(h.astype(whh_ref.dtype), whh_ref[...],
                       preferred_element_type=jnp.float32)
             + b_ref[...])
    pif = jnp.dot(c.astype(wpif_ref.dtype), wpif_ref[...],
                  preferred_element_type=jnp.float32)

    ingate = jax.nn.sigmoid(gates[:, 0 * H:1 * H] + pif[:, 0:H])
    forgetgate = jax.nn.sigmoid(gates[:, 1 * H:2 * H] + pif[:, H:2 * H])
    cellgate = jnp.tanh(gates[:, 2 * H:3 * H])

    cy = forgetgate * c + ingate * cellgate
    outgate = jax.nn.sigmoid(
        gates[:, 3 * H:4 * H]
        + jnp.dot(cy.astype(wpo_ref.dtype), wpo_ref[...],
                  preferred_element_type=jnp.float32))
    hy = outgate * jnp.tanh(cy)

    h_sc[...] = hy
    c_sc[...] = cy
    hseq_ref[0] = hy.astype(hseq_ref.dtype)
    cseq_ref[0] = cy.astype(cseq_ref.dtype)


# ----------------------------------------------------------------------------
# Parameter preparation (do ONCE, outside the per-step call path).
# ----------------------------------------------------------------------------
def prepare_params(params, compute_dtype=jnp.bfloat16):
    """Pre-transpose / fuse / cast weights into the kernel-friendly layout."""
    w_ih_t = params["w_ih"].T.astype(compute_dtype)          # (Cin, 4H)
    w_hh_t = params["w_hh"].T.astype(compute_dtype)          # (H,   4H)
    w_gates = jnp.concatenate([w_ih_t, w_hh_t], axis=0)      # (Cin+H, 4H)
    w_pif = jnp.concatenate([params["w_pi"].T, params["w_pf"].T],
                            axis=1).astype(compute_dtype)    # (H, 2H)
    w_po = params["w_po"].T.astype(compute_dtype)            # (H, H)
    gate = params["w_ih"].shape[0]
    bias = (params["b_ih"] + params["b_hh"]).reshape(1, gate).astype(jnp.float32)
    return {"w_gates": w_gates, "w_ih_t": w_ih_t, "w_hh_t": w_hh_t,
            "w_pif": w_pif, "w_po": w_po, "bias": bias}


# ----------------------------------------------------------------------------
# Wrappers
# ----------------------------------------------------------------------------
def ircnn_lstm_cell(x_nchw, prep, hidden=None):
    """Single-step forward, mirroring IRCNN_LSTMCell.forward (mode='LSTM').

    x_nchw: (B, C_in, 1, 1); prep: output of prepare_params(); hidden:
    optional (hx, cx), each (B, H) — defaults to zeros like the module.
    Returns (hy, cy), each (B, H) float32.
    """
    B = x_nchw.shape[0]
    x = x_nchw.reshape(B, x_nchw.shape[1])          # squeeze unit spatial dims
    H = prep["w_po"].shape[0]
    Cin = prep["w_gates"].shape[0] - H
    assert x.shape[1] == Cin
    cdtype = prep["w_gates"].dtype

    if hidden is None:
        hx = jnp.zeros((B, H), jnp.float32)
        cx = jnp.zeros((B, H), jnp.float32)
    else:
        hx, cx = hidden

    xh = jnp.concatenate([x.astype(cdtype), hx.astype(cdtype)], axis=1)
    cx = cx.astype(jnp.float32)

    vmem = pl.BlockSpec(memory_space=pltpu.MemorySpace.VMEM)

    # NOTE: for strictly in-place recurrent state update one could pack the
    # state as (B, 2H) input and alias it to the output via
    # input_output_aliases; left off here so the caller keeps ownership.
    hc = pl.pallas_call(
        _lstm_cell_kernel,
        out_shape=jax.ShapeDtypeStruct((B, 2 * H), jnp.float32),
        in_specs=[vmem] * 6,
        out_specs=vmem,
    )(xh, cx, prep["w_gates"], prep["w_pif"], prep["w_po"], prep["bias"])

    return hc[:, :H], hc[:, H:]


def ircnn_lstm_sequence(x_seq_nchw, prep, hidden=None):
    """Run the cell over a sequence inside ONE pallas_call.

    x_seq_nchw: (T, B, C_in, 1, 1).  Returns (h_seq, c_seq), each (T, B, H).
    Weights stay resident in VMEM across time steps; h/c live in VMEM scratch.
    """
    T, B, Cin = x_seq_nchw.shape[0], x_seq_nchw.shape[1], x_seq_nchw.shape[2]
    H = prep["w_po"].shape[0]
    x_seq = x_seq_nchw.reshape(T, B, Cin).astype(prep["w_gates"].dtype)

    if hidden is None:
        h0 = jnp.zeros((B, H), jnp.float32)
        c0 = jnp.zeros((B, H), jnp.float32)
    else:
        h0, c0 = hidden
    h0 = h0.astype(jnp.float32)
    c0 = c0.astype(jnp.float32)

    const2d = lambda shape: pl.BlockSpec(shape, lambda t: (0, 0))
    step3d = lambda shape: pl.BlockSpec(shape, lambda t: (t, 0, 0))

    h_seq, c_seq = pl.pallas_call(
        _lstm_seq_kernel,
        out_shape=(jax.ShapeDtypeStruct((T, B, H), jnp.float32),
                   jax.ShapeDtypeStruct((T, B, H), jnp.float32)),
        grid=(T,),
        in_specs=[
            step3d((1, B, Cin)),          # x_t
            const2d((B, H)),              # h0
            const2d((B, H)),              # c0
            const2d((Cin, 4 * H)),        # w_ih.T   (resident)
            const2d((H, 4 * H)),          # w_hh.T   (resident)
            const2d((H, 2 * H)),          # [w_pi.T | w_pf.T]
            const2d((H, H)),              # w_po.T
            const2d((1, 4 * H)),          # b_ih + b_hh
        ],
        out_specs=(step3d((1, B, H)), step3d((1, B, H))),
        scratch_shapes=[pltpu.VMEM((B, H), jnp.float32),
                        pltpu.VMEM((B, H), jnp.float32)],
        compiler_params=pltpu.CompilerParams(
            dimension_semantics=("arbitrary",)),   # sequential carry over time
    )(x_seq, h0, c0, prep["w_ih_t"], prep["w_hh_t"],
      prep["w_pif"], prep["w_po"], prep["bias"])
    return h_seq, c_seq


# ----------------------------------------------------------------------------
# Init + pure-JAX reference (for correctness check)
# ----------------------------------------------------------------------------
def init_params(key, in_channels, out_channels):
    """Deterministic init mirroring reset_parameters(): U(-stdv, stdv)."""
    stdv = 1.0 / math.sqrt(in_channels)
    gate = 4 * out_channels
    ks = jax.random.split(key, 7)
    u = lambda k, shape: jax.random.uniform(k, shape, jnp.float32, -stdv, stdv)
    return {
        "w_ih": u(ks[0], (gate, in_channels)),
        "w_hh": u(ks[1], (gate, out_channels)),
        "w_pi": u(ks[2], (out_channels, out_channels)),
        "w_pf": u(ks[3], (out_channels, out_channels)),
        "w_po": u(ks[4], (out_channels, out_channels)),
        "b_ih": u(ks[5], (gate,)),
        "b_hh": u(ks[6], (gate,)),
        # a, b exist in the module but are unused in mode='LSTM'.
        "a": jnp.array([0.5], jnp.float32),
        "b": jnp.array([0.5], jnp.float32),
    }


def _reference_step(x, hx, cx, params):
    """Pure f32 JAX reference of one LSTM step (matches LSTMdisCell 'LSTM')."""
    gates = (x @ params["w_ih"].T + params["b_ih"]
             + hx @ params["w_hh"].T + params["b_hh"])
    i, f, g, o = jnp.split(gates, 4, axis=1)
    i = jax.nn.sigmoid(i + cx @ params["w_pi"].T)
    f = jax.nn.sigmoid(f + cx @ params["w_pf"].T)
    g = jnp.tanh(g)
    cy = f * cx + i * g
    o = jax.nn.sigmoid(o + cy @ params["w_po"].T)
    hy = o * jnp.tanh(cy)
    return hy, cy


if __name__ == "__main__":
    key = jax.random.PRNGKey(0)
    B, C_IN, H_OUT, T = 8, 16, 32, 6

    k_x, k_h, k_c, k_p, k_xs = jax.random.split(key, 5)
    params = init_params(k_p, C_IN, H_OUT)
    prep = prepare_params(params)          # done once, outside the step path

    # --- single step ---------------------------------------------------------
    x = jax.random.normal(k_x, (B, C_IN, 1, 1), jnp.float32)     # NCHW, 1x1
    hx = jax.random.normal(k_h, (B, H_OUT), jnp.float32)
    cx = jax.random.normal(k_c, (B, H_OUT), jnp.float32)

    hy, cy = ircnn_lstm_cell(x, prep, hidden=(hx, cx))
    jax.block_until_ready((hy, cy))

    hy_ref, cy_ref = _reference_step(x.reshape(B, C_IN), hx, cx, params)
    # bf16 matmul operands -> relaxed tolerance vs. the f32 reference.
    assert jnp.allclose(hy, hy_ref, atol=2e-2, rtol=2e-2)
    assert jnp.allclose(cy, cy_ref, atol=2e-2, rtol=2e-2)

    # --- sequence (time loop inside the kernel) ------------------------------
    x_seq = jax.random.normal(k_xs, (T, B, C_IN, 1, 1), jnp.float32)
    h_seq, c_seq = ircnn_lstm_sequence(x_seq, prep, hidden=(hx, cx))
    jax.block_until_ready((h_seq, c_seq))

    h_r, c_r = hx, cx
    hs_ref, cs_ref = [], []
    for t in range(T):
        h_r, c_r = _reference_step(x_seq[t].reshape(B, C_IN), h_r, c_r, params)
        hs_ref.append(h_r)
        cs_ref.append(c_r)
    hs_ref = jnp.stack(hs_ref)
    cs_ref = jnp.stack(cs_ref)
    assert jnp.allclose(h_seq, hs_ref, atol=5e-2, rtol=5e-2)
    assert jnp.allclose(c_seq, cs_ref, atol=5e-2, rtol=5e-2)

    print("KERNEL_OK")
</pallas_src>

<mosaic_0001>
module attributes {stable_mosaic.version = 11 : i64} {
  func.func @_lstm_cell_kernel(%arg0: memref<8x48xbf16, #tpu.memory_space<vmem>>, %arg1: memref<8x32xf32, #tpu.memory_space<vmem>>, %arg2: memref<48x128xbf16, #tpu.memory_space<vmem>>, %arg3: memref<32x64xbf16, #tpu.memory_space<vmem>>, %arg4: memref<32x32xbf16, #tpu.memory_space<vmem>>, %arg5: memref<1x128xf32, #tpu.memory_space<vmem>>, %arg6: memref<8x64xf32, #tpu.memory_space<vmem>>) attributes {dimension_semantics = [], scalar_prefetch = 0 : i64, scratch_operands = 0 : i64, tpu.core_type = #tpu.core_type<tc>} {
    %c0 = arith.constant 0 : index
    %c0_0 = arith.constant 0 : index
    %0 = vector.load %arg0[%c0, %c0_0] : memref<8x48xbf16, #tpu.memory_space<vmem>>, vector<8x48xbf16>
    %c0_1 = arith.constant 0 : index
    %c0_2 = arith.constant 0 : index
    %1 = vector.load %arg1[%c0_1, %c0_2] : memref<8x32xf32, #tpu.memory_space<vmem>>, vector<8x32xf32>
    %c0_3 = arith.constant 0 : index
    %c0_4 = arith.constant 0 : index
    %2 = vector.load %arg2[%c0_3, %c0_4] : memref<48x128xbf16, #tpu.memory_space<vmem>>, vector<48x128xbf16>
    %cst = arith.constant dense<0.000000e+00> : vector<8x128xf32>
    %3 = tpu.matmul %0, %2, %cst {dimension_numbers = #tpu.dot_dimension_numbers<[1], [0], [0], [1], [0, 0, 1, 1], [], []>} : vector<8x48xbf16>, vector<48x128xbf16>, vector<8x128xf32> -> vector<8x128xf32>
    %c0_5 = arith.constant 0 : index
    %c0_6 = arith.constant 0 : index
    %4 = vector.load %arg5[%c0_5, %c0_6] : memref<1x128xf32, #tpu.memory_space<vmem>>, vector<1x128xf32>
    %5 = vector.broadcast %4 : vector<1x128xf32> to vector<8x128xf32>
    %6 = arith.addf %3, %5 : vector<8x128xf32>
    %7 = arith.truncf %1 : vector<8x32xf32> to vector<8x32xbf16>
    %c0_7 = arith.constant 0 : index
    %c0_8 = arith.constant 0 : index
    %8 = vector.load %arg3[%c0_7, %c0_8] : memref<32x64xbf16, #tpu.memory_space<vmem>>, vector<32x64xbf16>
    %cst_9 = arith.constant dense<0.000000e+00> : vector<8x64xf32>
    %9 = tpu.matmul %7, %8, %cst_9 {dimension_numbers = #tpu.dot_dimension_numbers<[1], [0], [0], [1], [0, 0, 1, 1], [], []>} : vector<8x32xbf16>, vector<32x64xbf16>, vector<8x64xf32> -> vector<8x64xf32>
    %10 = vector.extract_strided_slice %6 {offsets = [0, 0], sizes = [8, 32], strides = [1, 1]} : vector<8x128xf32> to vector<8x32xf32>
    %11 = vector.extract_strided_slice %9 {offsets = [0, 0], sizes = [8, 32], strides = [1, 1]} : vector<8x64xf32> to vector<8x32xf32>
    %12 = arith.addf %10, %11 : vector<8x32xf32>
    %13 = arith.negf %12 : vector<8x32xf32>
    %14 = math.exp %13 : vector<8x32xf32>
    %cst_10 = arith.constant 1.000000e+00 : f32
    %15 = vector.broadcast %cst_10 : f32 to vector<8x32xf32>
    %16 = arith.addf %15, %14 : vector<8x32xf32>
    %17 = arith.divf %15, %16 : vector<8x32xf32>
    %18 = vector.extract_strided_slice %6 {offsets = [0, 32], sizes = [8, 32], strides = [1, 1]} : vector<8x128xf32> to vector<8x32xf32>
    %19 = vector.extract_strided_slice %9 {offsets = [0, 32], sizes = [8, 32], strides = [1, 1]} : vector<8x64xf32> to vector<8x32xf32>
    %20 = arith.addf %18, %19 : vector<8x32xf32>
    %21 = arith.negf %20 : vector<8x32xf32>
    %22 = math.exp %21 : vector<8x32xf32>
    %cst_11 = arith.constant 1.000000e+00 : f32
    %23 = vector.broadcast %cst_11 : f32 to vector<8x32xf32>
    %24 = arith.addf %23, %22 : vector<8x32xf32>
    %25 = arith.divf %23, %24 : vector<8x32xf32>
    %26 = vector.extract_strided_slice %6 {offsets = [0, 64], sizes = [8, 32], strides = [1, 1]} : vector<8x128xf32> to vector<8x32xf32>
    %27 = math.tanh %26 : vector<8x32xf32>
    %28 = arith.mulf %25, %1 : vector<8x32xf32>
    %29 = arith.mulf %17, %27 : vector<8x32xf32>
    %30 = arith.addf %28, %29 : vector<8x32xf32>
    %31 = vector.extract_strided_slice %6 {offsets = [0, 96], sizes = [8, 32], strides = [1, 1]} : vector<8x128xf32> to vector<8x32xf32>
    %32 = arith.truncf %30 : vector<8x32xf32> to vector<8x32xbf16>
    %c0_12 = arith.constant 0 : index
    %c0_13 = arith.constant 0 : index
    %33 = vector.load %arg4[%c0_12, %c0_13] : memref<32x32xbf16, #tpu.memory_space<vmem>>, vector<32x32xbf16>
    %cst_14 = arith.constant dense<0.000000e+00> : vector<8x32xf32>
    %34 = tpu.matmul %32, %33, %cst_14 {dimension_numbers = #tpu.dot_dimension_numbers<[1], [0], [0], [1], [0, 0, 1, 1], [], []>} : vector<8x32xbf16>, vector<32x32xbf16>, vector<8x32xf32> -> vector<8x32xf32>
    %35 = arith.addf %31, %34 : vector<8x32xf32>
    %36 = arith.negf %35 : vector<8x32xf32>
    %37 = math.exp %36 : vector<8x32xf32>
    %cst_15 = arith.constant 1.000000e+00 : f32
    %38 = vector.broadcast %cst_15 : f32 to vector<8x32xf32>
    %39 = arith.addf %38, %37 : vector<8x32xf32>
    %40 = arith.divf %38, %39 : vector<8x32xf32>
    %41 = math.tanh %30 : vector<8x32xf32>
    %42 = arith.mulf %40, %41 : vector<8x32xf32>
    %43 = tpu.concatenate %42, %30 in 1 : vector<8x32xf32>, vector<8x32xf32> -> vector<8x64xf32>
    %c0_16 = arith.constant 0 : index
    %c0_17 = arith.constant 0 : index
    %44 = vector.load %arg6[%c0_16, %c0_17] : memref<8x64xf32, #tpu.memory_space<vmem>>, vector<8x64xf32>
    tpu.vector_store %arg6[%c0_16, %c0_17], %43 {strides = array<i32>} : memref<8x64xf32, #tpu.memory_space<vmem>>, vector<8x64xf32>,
    return
  }
}

</mosaic_0001>

<bundles_post_ra>
// kernel: tpu_custom_call.1
= control target key start
LH: loop header
LB: loop body
LE: loop exit
PB: predicated region body
PF: predicated region fallthrough
CT: control target
= control target key end

     0   :  { %11 = vsyncpa [#allocation3], 0  ;;  %s716_s0 = inlined_call_operand.hbm [shape: bf16[8,48], index: 0, kind: input, shape index: {}]   ;;  %s717_s1 = inlined_call_operand.hbm [shape: f32[8,32], index: 1, kind: input, shape index: {}]   ;;  %s718_s2 = inlined_call_operand.hbm [shape: bf16[48,128], index: 2, kind: input, shape index: {}]   ;;  %s719_s3 = inlined_call_operand.hbm [shape: bf16[32,64], index: 3, kind: input, shape index: {}]   ;;  %s720_s4 = inlined_call_operand.hbm [shape: bf16[32,32], index: 4, kind: input, shape index: {}]   ;;  %s721_s5 = inlined_call_operand.vmem [shape: f32[1,128], index: 5, kind: input, shape index: {}]   ;;  %s722_s6 = inlined_call_operand.hbm [shape: f32[8,64], index: 6, kind: output, shape index: {}]  }
   0x1   :  { %12 = vsyncpa [#allocation6], 0 }
   0x2   :  { %13 = vsyncpa [#allocation9], 0 }
   0x3   :  { %14 = vsyncpa [#allocation4], 0  ;;  %s574_s21 = smov [#allocation5]   ;;  %s434_s25 = scalar_lea.hbm %s717_s1, 128 }
   0x4   :  { %s31_s22 = sshll.u32 %s574_s21, 4  ;;  %p435_p0 = scmp.ne.s32.totalorder %s717_s1, %s434_s25  ;;  %s32_s22 = int_to_ptr.vmem [resolvable:$true] %s31_s22 }
   0x5   :  { %p438_p1 = scmp.lt.u32.totalorder %s434_s25, %s717_s1 }
   0x7   :  { %p440_p2 = pnand %p438_p1, %p435_p0 }
   0x9   :  { %443 = shalt.err (!%p440_p2)
}
   0xa   :  { %s444_s30 = scalar_lea.vmem %s32_s22, 128  ;;  %p449_p4 = scmp.lt.s32.totalorder %s32_s22, %s32_s22 }
   0xb   :  { %p445_p3 = scmp.ne.s32.totalorder %s32_s22, %s444_s30  ;;  %p450_p5 = scmp.lt.s32.totalorder %s444_s30, %s444_s30 }
   0xd   :  { %p451_p6 = por %p450_p5, %p449_p4 }
   0xf   :  { %p452_p7 = pnand %p451_p6, %p445_p3 }
  0x11   :  { %455 = shalt.err (!%p452_p7)
}
  0x12   :  { %34 = dma.hbm_to_vmem [thread:$0]  %s717_s1, 128, %s32_s22, [#allocation6]  }
  0x13   :  { %s575_s9 = smov [#allocation8]   ;;  %s576_s11 = smov [#allocation2]  }
  0x14   :  { %s52_s10 = sshll.u32 %s575_s9, 4  ;;  %s21_s12 = sshll.u32 %s576_s11, 4  ;;  %s53_s10 = int_to_ptr.vmem [resolvable:$true] %s52_s10  ;;  %s22_s12 = int_to_ptr.vmem [resolvable:$true] %s21_s12 }
  0x15   :  { %s456_s15 = scalar_lea.hbm %s719_s3, 256 }
  0x16   :  { %p457_p8 = scmp.ne.s32.totalorder %s719_s3, %s456_s15  ;;  %p460_p9 = scmp.lt.u32.totalorder %s456_s15, %s719_s3 }
  0x18   :  { %p462_p10 = pnand %p460_p9, %p457_p8 }
  0x1a   :  { %465 = shalt.err (!%p462_p10)
}
  0x1b   :  { %s466_s1 = scalar_lea.vmem %s53_s10, 256  ;;  %p471_p12 = scmp.lt.s32.totalorder %s53_s10, %s53_s10 }
  0x1c   :  { %p467_p11 = scmp.ne.s32.totalorder %s53_s10, %s466_s1  ;;  %p472_p13 = scmp.lt.s32.totalorder %s466_s1, %s466_s1 }
  0x1e   :  { %p473_p0 = por %p472_p13, %p471_p12 }
  0x20   :  { %p474_p1 = pnand %p473_p0, %p467_p11 }
  0x22   :  { %477 = shalt.err (!%p474_p1)
}
  0x23   :  { %s577_s20 = smov 64   ;;  %s578_s21 = smov 4  }
  0x24   :  { %58 = dma.hbm_to_vmem [thread:$0]  %s719_s3, 256, %s53_s10, [#allocation9], %s577_s20, %s577_s20, %s578_s21  }
  0x25   :  { %s478_s26 = scalar_lea.hbm %s716_s0, 64 }
  0x26   :  { %p479_p2 = scmp.ne.s32.totalorder %s716_s0, %s478_s26  ;;  %p482_p3 = scmp.lt.u32.totalorder %s478_s26, %s716_s0 }
  0x28   :  { %p484_p4 = pnand %p482_p3, %p479_p2 }
  0x2a   :  { %487 = shalt.err (!%p484_p4)
}
  0x2b   :  { %s488_s7 = scalar_lea.vmem %s22_s12, 64  ;;  %p493_p6 = scmp.lt.s32.totalorder %s22_s12, %s22_s12 }
  0x2c   :  { %p489_p5 = scmp.ne.s32.totalorder %s22_s12, %s488_s7  ;;  %p494_p7 = scmp.lt.s32.totalorder %s488_s7, %s488_s7 }
  0x2e   :  { %p495_p8 = por %p494_p7, %p493_p6 }
  0x30   :  { %p496_p9 = pnand %p495_p8, %p489_p5 }
  0x32   :  { %499 = shalt.err (!%p496_p9)
}
  0x33   :  { %24 = dma.hbm_to_vmem [thread:$0]  %s716_s0, 64, %s22_s12, [#allocation3]  }
  0x34   :  { %s579_s9 = smov [#allocation7]   ;;  %s580_s11 = smov [#allocation10]  }
  0x35   :  { %s40_s10 = sshll.u32 %s579_s9, 4  ;;  %s64_s13 = sshll.u32 %s580_s11, 4  ;;  %s41_s10 = int_to_ptr.vmem [resolvable:$true] %s40_s10  ;;  %s65_s13 = int_to_ptr.vmem [resolvable:$true] %s64_s13 }
  0x36   :  { %s500_s16 = scalar_lea.hbm %s718_s2, 384 }
  0x37   :  { %p501_p10 = scmp.ne.s32.totalorder %s718_s2, %s500_s16  ;;  %p504_p11 = scmp.lt.u32.totalorder %s500_s16, %s718_s2 }
  0x39   :  { %p506_p12 = pnand %p504_p11, %p501_p10 }
  0x3b   :  { %509 = shalt.err (!%p506_p12)
}
  0x3c   :  { %s510_s0 = scalar_lea.vmem %s41_s10, 384  ;;  %p515_p0 = scmp.lt.s32.totalorder %s41_s10, %s41_s10 }
  0x3d   :  { %p511_p13 = scmp.ne.s32.totalorder %s41_s10, %s510_s0  ;;  %p516_p1 = scmp.lt.s32.totalorder %s510_s0, %s510_s0 }
  0x3f   :  { %p517_p2 = por %p516_p1, %p515_p0 }
  0x41   :  { %p518_p3 = pnand %p517_p2, %p511_p13 }
  0x43   :  { %521 = shalt.err (!%p518_p3)
}
  0x44   :  { %46 = dma.hbm_to_vmem [thread:$0]  %s718_s2, 384, %s41_s10, [#allocation6], %s577_s20, %s577_s20, %s578_s21  }
  0x45   :  { %s522_s25 = scalar_lea.hbm %s720_s4, 256 }
  0x46   :  { %p523_p4 = scmp.ne.s32.totalorder %s720_s4, %s522_s25  ;;  %p526_p5 = scmp.lt.u32.totalorder %s522_s25, %s720_s4 }
  0x48   :  { %p528_p6 = pnand %p526_p5, %p523_p4 }
  0x4a   :  { %531 = shalt.err (!%p528_p6)
}
  0x4b   :  { %s532_s30 = scalar_lea.vmem %s65_s13, 256  ;;  %p537_p8 = scmp.lt.s32.totalorder %s65_s13, %s65_s13 }
  0x4c   :  { %p533_p7 = scmp.ne.s32.totalorder %s65_s13, %s532_s30  ;;  %p538_p9 = scmp.lt.s32.totalorder %s532_s30, %s532_s30 }
  0x4e   :  { %p539_p10 = por %p538_p9, %p537_p8 }
  0x50   :  { %p540_p11 = pnand %p539_p10, %p533_p7 }
  0x52   :  { %543 = shalt.err (!%p540_p11)
}
  0x53   :  { %70 = dma.hbm_to_vmem [thread:$0]  %s720_s4, 256, %s65_s13, [#allocation9], %s577_s20, %s577_s20, %s578_s21  }
  0x54   :  { %566 = dma.done.wait [#allocation3], 64  }
  0x55   :  { %567 = vsyncadd [#allocation3], 4294967232 }
  0x56   :  { %568 = dma.done.wait [#allocation6], 512  }
  0x57   :  { %569 = vsyncadd [#allocation6], 4294966784 }
  0x58   :  { %570 = dma.done.wait [#allocation9], 512  }
  0x59   :  { %571 = vsyncadd [#allocation9], 4294966784  ;;  %v581_v0 = vmov 0.0   ;;  %vm582_vm0 = vmmov 0   ;;  %v415_v1 = vld [vmem:[#allocation7] sm:$0xff]   ;;  %v416_v2 = vld [vmem:[#allocation7 + $0x8] sm:$0xff]  }
  0x5a   :  { %377 = vmatprep.subr.bf16.mxu0 %v581_v0  ;;  %387 = vmatprep.subr.bf16.mxu1 %v581_v0  ;;  %v417_v3 = vld [vmem:[#allocation8] sm:$0xff]   ;;  %v419_v4 = vld [vmem:[#allocation8 + $0x8] sm:$0xff]   ;;  %v418_v5 = vld [vmem:[#allocation7 + $0x10] sm:$0xff]   ;;  %vm183_vm1 = vcmask 261120   ;;  %vm122_vm2 = vcmask 392192   ;;  %s583_s3 = smov 32  }
  0x5b   :  { %383 = vmatprep.mubr.msk.bf16.mxu0 %vm582_vm0, %v581_v0  ;;  %391 = vmatprep.mubr.msk.bf16.mxu1 %vm582_vm0, %v581_v0  ;;  %v90_v6 = vld [vmem:[#allocation5] sm:$0xff]  ;;  %v89_v8 = vld [vmem:[#allocation2] sm:$0xf]  ;;  %v420_v27 = vld [vmem:[#allocation10] sm:$0xff]   ;;  %vm335_vm3 = vcmask 523264  }
  0x5c   :  { %378 = vmatpush3.bf16.msra.mxu0 %v415_v1  ;;  %388 = vmatpush3.bf16.msra.mxu1 %v417_v3  ;;  %v166_v7 = vpack.c.bf16 %v90_v6, %v90_v6  ;;  %v354_v9 = vld [vmem:[%s721_s5] ss:$0 sm:$0xff]  ;;  %s584_s5 = smov 96  }
  0x5d   :  { %379 = vmatprep.subr.bf16.mxu0 %v581_v0  ;;  %389 = vmatprep.subr.bf16.mxu1 %v581_v0  ;;  %v421_v28 = vld [vmem:[#allocation10 + $0x8] sm:$0xff]  }
  0x60   :  { %380 = vmatpush3.bf16.msra.mxu0 %v416_v2  ;;  %390 = vmatpush3.bf16.msra.mxu1 %v419_v4 }
  0x61   :  { %381 = vmatprep.subr.bf16.mxu0 %v581_v0  ;;  %395 = vmatprep.subr.bf16.mxu1 %v581_v0 }
  0x63   :  { %392 = vmatmul.mubr.msk.bf16.vlgmr.msra.gmra.mrb[0].mxu1 %vm183_vm1, %v166_v7 }
  0x64   :  { %382 = vmatpush3.bf16.msra.mxu0 %v418_v5  ;;  %399 = vmatprep.mubr.msk.bf16.mxu1 %vm582_vm0, %v581_v0 }
  0x65   :  { %396 = vmatpush3.bf16.msra.mxu1 %v420_v27 }
  0x66   :  { %397 = vmatprep.subr.bf16.mxu1 %v581_v0 }
  0x67   :  { %384 = vmatmul.mubr.msk.bf16.vlgmr.msra.gmra.mrb[0].mxu0 %vm122_vm2, %v89_v8 }
  0x69   :  { %398 = vmatpush3.bf16.msra.mxu1 %v421_v28 }
 0x136   :  { %v221_v10 = vpop.f32.mrb[0].mxu1 }
 0x137   :  { %v393_v11 = vpop.f32.mrb[1].mxu1 }
 0x138   :  { %v224_v13 = vpop.f32.mrb[2].mxu1 }
 0x139   :  { %v394_v16 = vpop.f32.mrb[3].mxu1 }
 0x13a   :  { %v160_v12 = vpop.f32.mrb[0].mxu0 }
 0x13b   :  { %v161_v14 = vadd.f32 %v354_v9, %v160_v12  ;;  %v385_v15 = vpop.f32.mrb[1].mxu0 }
 0x13c   :  { %v163_v17 = vpop.f32.mrb[2].mxu0 }
 0x13d   :  { %v386_v18 = vpop.f32.mrb[3].mxu0  ;;  %422 = vtanh.f32 %v161_v14  ;;  %v227_v20 = vadd.f32 %v221_v10, %v161_v14 }
 0x13f   :  { %v362_v21 = vmul.f32 -1.442695, %v227_v20 }
 0x141   :  { %424 = vpow2.f32 %v362_v21 }
 0x147   :  { %v423_v19 = vpop.eup %422 }
 0x148   :  { %241 = vrot.lane.b32.xlu0 %v423_v19, %s577_s20 }
 0x14b   :  { %v425_v22 = vpop.eup %424 }
 0x14c   :  { %236 = vrot.lane.b32.xlu0 %v90_v6, %s583_s3  ;;  %v231_v23 = vadd.f32 1.0, %v425_v22 }
 0x14e   :  { %426 = vrcp.f32 %v231_v23 }
 0x158   :  { %v427_v24 = vpop.eup %426 }
 0x1ba   :  { %v242_v25 = vpop.permute.xlu0 %241 }
 0x1bb   :  { %v244_v26 = vmul.f32 %v427_v24, %v242_v25 }
 0x1bd   :  { %246 = vrot.lane.b32.xlu1 %v244_v26, %s583_s3 }
 0x1be   :  { %v237_v29 = vpop.permute.xlu0 %236 }
 0x1bf   :  { %v239_v30 = vmul.f32 %v427_v24, %v237_v29 }
 0x22f   :  { %v247_v31 = vpop.permute.xlu1 %246 }
 0x230   :  { %v249_v32 = vadd.f32 %v247_v31, %v239_v30 }
 0x232   :  { %428 = vtanh.f32 %v249_v32  ;;  %v250_v33 = vpack.c.bf16 %v249_v32, %v249_v32 }
 0x234   :  { %256 = vrot.lane.b32.xlu1 %v250_v33, %s584_s5 }
 0x23c   :  { %v429_v34 = vpop.eup %428 }
 0x23d   :  { %326 = vrot.lane.b32.xlu1 %v429_v34, %s577_s20  ;;  %s585_s20 = smov [#allocation11]  }
 0x23e   :  { %s343_s8 = sshll.u32 %s585_s20, 4  ;;  %s344_s8 = int_to_ptr.vmem [resolvable:$true] %s343_s8 }
 0x23f   :  { %s544_s9 = scalar_lea.vmem %s344_s8, 128  ;;  %p549_p13 = scmp.lt.s32.totalorder %s344_s8, %s344_s8 }
 0x240   :  { %p545_p12 = scmp.ne.s32.totalorder %s344_s8, %s544_s9  ;;  %p550_p0 = scmp.lt.s32.totalorder %s544_s9, %s544_s9 }
 0x242   :  { %p551_p1 = por %p550_p0, %p549_p13 }
 0x244   :  { %p552_p2 = pnand %p551_p1, %p545_p12 }
 0x2a6   :  { %v257_v35 = vpop.permute.xlu1 %256 }
 0x2a7   :  { %400 = vmatmul.mubr.msk.bf16.vlgmr.msra.gmra.mrb[4].mxu1 %vm183_vm1, %v257_v35 }
 0x2af   :  { %v327_v46 = vpop.permute.xlu1 %326 }
 0x37a   :  { %v307_v36 = vpop.f32.mrb[4].mxu1 }
 0x37b   :  { %314 = vrot.lane.b32.xlu0 %v307_v36, %s584_s5  ;;  %v401_v37 = vpop.f32.mrb[5].mxu1 }
 0x37c   :  { %v310_v38 = vpop.f32.mrb[6].mxu1 }
 0x37d   :  { %v402_v39 = vpop.f32.mrb[7].mxu1 }
 0x3ed   :  { %v315_v40 = vpop.permute.xlu0 %314 }
 0x3ee   :  { %v317_v41 = vadd.f32 %v315_v40, %v161_v14 }
 0x3f0   :  { %v366_v42 = vmul.f32 -1.442695, %v317_v41 }
 0x3f2   :  { %430 = vpow2.f32 %v366_v42 }
 0x3fc   :  { %v431_v43 = vpop.eup %430 }
 0x3fd   :  { %v321_v44 = vadd.f32 1.0, %v431_v43 }
 0x3ff   :  { %432 = vrcp.f32 %v321_v44 }
 0x409   :  { %v433_v45 = vpop.eup %432 }
 0x40a   :  { %v329_v47 = vmul.f32 %v433_v45, %v327_v46 }
 0x40c   :  { %331 = vrot.lane.b32.xlu0 %v329_v47, %s583_s3 }
 0x47e   :  { %v332_v48 = vpop.permute.xlu0 %331 }
 0x47f   :  { %v334_v49 = vsel %vm183_vm1, %v332_v48, %v249_v32 }
 0x480   :  { %336 = vst.msk [vmem:[#allocation11] sm:$0xff] %vm335_vm3, %v334_v49 }
 0x481   :  { %555 = shalt.err (!%p552_p2)
}
 0x482   :  { %s556_s13 = scalar_lea.hbm %s722_s6, 128 }
 0x483   :  { %p557_p3 = scmp.ne.s32.totalorder %s722_s6, %s556_s13  ;;  %p560_p4 = scmp.lt.u32.totalorder %s556_s13, %s722_s6 }
 0x485   :  { %p562_p5 = pnand %p560_p4, %p557_p3 }
 0x487   :  { %565 = shalt.err (!%p562_p5)
}
 0x488   :  { %346 = dma.vmem_to_hbm [thread:$0]  %s344_s8, 128, %s722_s6, [#allocation4]  }
 0x489   :  { %572 = dma.done.wait [#allocation4], 128  }
 0x48a   :  { %573 = vsyncadd [#allocation4], 4294967168 }
 0x48b   :  { %350 = vsyncpa [#allocation3], 1 }
 0x48c   :  { %351 = vsyncpa [#allocation6], 1 }
 0x48d   :  { %352 = vsyncpa [#allocation9], 1 }
 0x48e   :  { %353 = vsyncpa [#allocation4], 1 }

</bundles_post_ra>
